<compile_context>
chip_gen: v6e
topology: v6e:2x2x1
jax: 0.10.0
libtpu: 0.0.40
codegen_flags: <defaults>
</compile_context>

<pallas_src>
import math
from functools import partial

import jax
import jax.numpy as jnp
from jax.experimental import pallas as pl
from jax.experimental.pallas import tpu as pltpu

LANE = 128         # lane width: last-dim tiling unit
SUBLANE = 8        # sublane width: second-to-last-dim tiling unit
MAX_TILE_B = 4096  # batch tile cap: amortizes grid-step overhead, fits scoped VMEM


def _round_up(x, m):
    return ((x + m - 1) // m) * m


def _cdiv(a, b):
    return -(-a // b)


def decoder_kernel(z_ref, w1_ref, b1_ref, w2_ref, b2_ref, w3_ref, b3_ref, o_ref,
                   *, act_dtype):
    """One batch tile of the 3-layer MLP.

    Matmuls run in the weight dtype (f32 or bf16) and always accumulate in f32.
    Bias-add / ReLU run in `act_dtype` (bf16 on chips with a bf16 VPU, f32 on
    v5e and older).  Final bias-add stays in f32 for accuracy.
    """
    w_dtype = w1_ref.dtype

    z = z_ref[...].astype(w_dtype)                     # no-op when already cast
    h = jnp.dot(z, w1_ref[...], preferred_element_type=jnp.float32)
    h = h.astype(act_dtype) + b1_ref[...].astype(act_dtype)
    h = jnp.maximum(h, 0.0).astype(w_dtype)            # ReLU

    h = jnp.dot(h, w2_ref[...], preferred_element_type=jnp.float32)
    h = h.astype(act_dtype) + b2_ref[...].astype(act_dtype)
    h = jnp.maximum(h, 0.0).astype(w_dtype)            # ReLU

    out = jnp.dot(h, w3_ref[...], preferred_element_type=jnp.float32) + b3_ref[...]
    o_ref[...] = out.astype(o_ref.dtype)


def init_decoder_params(key, latent_dim, output_dim, param_dtype=jnp.bfloat16):
    """PyTorch-default init (uniform +/- 1/sqrt(fan_in)), padded to TPU tiles.

    Layer l weight has logical shape (fan_in_l, fan_out_l), stored as
    (padded_in_l, padded_out_l):
      * contraction (in) dims padded to sublane/lane-friendly sizes,
      * hidden out dims padded to 128 lanes,
      * the FINAL out dim is left unpadded (== output_dim) so the kernel writes
        only useful columns to HBM.
    Padding is zeros, so the padded network computes the same function.
    Biases are stored as f32 (1, padded_out).
    """
    dims = [latent_dim, 32, 64, output_dim]
    pin_list = [_round_up(latent_dim, SUBLANE), _round_up(32, LANE), _round_up(64, LANE)]
    pout_list = [_round_up(32, LANE), _round_up(64, LANE), output_dim]

    params = []
    for l in range(3):
        fan_in, fan_out = dims[l], dims[l + 1]
        pin, pout = pin_list[l], pout_list[l]
        key, kw, kb = jax.random.split(key, 3)
        bound = 1.0 / math.sqrt(fan_in)
        w = jax.random.uniform(kw, (fan_in, fan_out), jnp.float32, -bound, bound)
        b = jax.random.uniform(kb, (fan_out,), jnp.float32, -bound, bound)
        w = jnp.pad(w, ((0, pin - fan_in), (0, pout - fan_out))).astype(param_dtype)
        b = jnp.pad(b, (0, pout - fan_out)).reshape(1, pout)   # bias stays f32
        params.extend([w, b])
    return tuple(params)


def _choose_tile_b(batch, max_tile_b):
    """Batch tile selection.

    * Tiny batches: smallest legal M tile (sublane multiple) — avoids doing and
      writing back 16x the needed work for e.g. batch=8.
    * Larger batches: split into >= 2 tiles so the "parallel" grid axis shards
      across both v7x TensorCores, with each tile a 128-multiple capped at
      max_tile_b to amortize the ~0.35us per-grid-step overhead.
    """
    if batch <= LANE:
        return _round_up(batch, SUBLANE)
    n_tiles = max(2, _cdiv(batch, max_tile_b))
    return _round_up(_cdiv(batch, n_tiles), LANE)


def _z_block_spec(tile_b, latent_pad, multi_tile):
    idx = lambda i: (i, 0)
    if multi_tile:
        # The z tile is tiny -> DMA latency-dominated; a 3rd buffer hides issue/
        # arrival latency behind each short grid step (mainly a v7x win).
        try:
            return pl.BlockSpec((tile_b, latent_pad), idx, pipeline_mode=pl.Buffered(3))
        except (AttributeError, TypeError):
            pass
    return pl.BlockSpec((tile_b, latent_pad), idx)


def _default_act_dtype(w_dtype):
    """bf16 elementwise only where the VPU is bf16-native (v6e / v7x)."""
    if w_dtype != jnp.bfloat16:
        return jnp.float32
    try:
        kind = jax.devices()[0].device_kind.lower()
    except Exception:
        return jnp.float32
    return jnp.bfloat16 if ("v6" in kind or "v7" in kind) else jnp.float32


@partial(jax.jit, static_argnames=("max_tile_b", "out_dtype", "act_dtype"))
def _decoder_forward(z, params, *, max_tile_b, out_dtype, act_dtype):
    w1, b1, w2, b2, w3, b3 = params
    batch, latent_dim = z.shape
    latent_pad = w1.shape[0]          # latent dim rounded up to a sublane multiple
    out_dim = w3.shape[1]             # exact output_dim (no lane padding)
    w_dtype = w1.dtype

    # Cast z once in the wrapper (halves the streamed z bytes when weights are bf16).
    if w_dtype == jnp.bfloat16 and z.dtype != jnp.bfloat16:
        z = z.astype(jnp.bfloat16)

    tile_b = _choose_tile_b(batch, max_tile_b)
    padded_batch = _round_up(batch, tile_b)
    num_tiles = padded_batch // tile_b

    # One pad covers both the batch remainder and the latent sublane padding.
    if padded_batch != batch or latent_pad != latent_dim:
        z = jnp.pad(z, ((0, padded_batch - batch), (0, latent_pad - latent_dim)))

    # Weights / biases: constant index_map -> block stays resident in VMEM.
    resident = lambda a: pl.BlockSpec(a.shape, lambda i: (0, 0))

    out = pl.pallas_call(
        partial(decoder_kernel, act_dtype=act_dtype),
        out_shape=jax.ShapeDtypeStruct((padded_batch, out_dim), out_dtype),
        grid=(num_tiles,),
        in_specs=[
            _z_block_spec(tile_b, latent_pad, num_tiles > 1),
            resident(w1), resident(b1),
            resident(w2), resident(b2),
            resident(w3), resident(b3),
        ],
        # Narrow output block (tile_b, output_dim): masked vst in VMEM is cheap,
        # HBM writes carry only useful columns.
        out_specs=pl.BlockSpec((tile_b, out_dim), lambda i: (i, 0)),
        compiler_params=pltpu.CompilerParams(
            dimension_semantics=("parallel",),   # pipelining + v7x dual-core sharding
            vmem_limit_bytes=32 << 20,           # headroom for 4096-row tiles on v5e
        ),
    )(z, w1, b1, w2, b2, w3, b3)

    # Strip batch padding (columns are already exact).
    return out[:batch] if padded_batch != batch else out


def decoder_forward(z, params, *, max_tile_b=MAX_TILE_B, out_dtype=None, act_dtype=None):
    """Run the 3-layer MLP decoder as a single batch-tiled Pallas kernel."""
    if out_dtype is None:
        out_dtype = z.dtype          # keep caller-visible precision unless overridden
    if act_dtype is None:
        act_dtype = _default_act_dtype(params[0].dtype)
    return _decoder_forward(z, params, max_tile_b=int(max_tile_b),
                            out_dtype=out_dtype, act_dtype=act_dtype)


def decoder_reference(z, params):
    """Plain-JAX reference on the same (padded) params, all math in f32."""
    w1, b1, w2, b2, w3, b3 = params
    f32 = lambda a: a.astype(jnp.float32)
    zp = jnp.pad(z.astype(jnp.float32), ((0, 0), (0, w1.shape[0] - z.shape[1])))
    h1 = jnp.maximum(zp @ f32(w1) + b1, 0.0)
    h2 = jnp.maximum(h1 @ f32(w2) + b2, 0.0)
    return h2 @ f32(w3) + b3


if __name__ == "__main__":
    latent_dim, output_dim = 16, 24

    key = jax.random.PRNGKey(0)
    key, kz1, kz2 = jax.random.split(key, 3)

    # --- f32 weights, tiny batch -> single 8-row tile (small-batch path) ---
    params_f32 = init_decoder_params(key, latent_dim, output_dim, jnp.float32)
    z_small = jax.random.normal(kz1, (8, latent_dim), jnp.float32)
    out_small = jax.block_until_ready(decoder_forward(z_small, params_f32))
    ref_small = decoder_reference(z_small, params_f32)
    assert out_small.shape == (8, output_dim)
    assert jnp.allclose(out_small, ref_small, atol=1e-5, rtol=1e-5)

    # --- f32 weights, larger batch -> 2-tile "parallel" grid + batch padding ---
    z_big = jax.random.normal(kz2, (1000, latent_dim), jnp.float32)
    out_big = jax.block_until_ready(decoder_forward(z_big, params_f32))
    ref_big = decoder_reference(z_big, params_f32)
    assert out_big.shape == (1000, output_dim)
    assert jnp.allclose(out_big, ref_big, atol=1e-5, rtol=1e-5)

    # --- bf16 weights (default): halved weight/z bytes, f32 accumulation.
    # bf16 weights/activations vs. the f32 reference -> expected small precision
    # loss, hence the loose tolerance (output itself stays f32 via out_dtype).
    params_bf16 = init_decoder_params(key, latent_dim, output_dim)  # bf16 default
    out_bf16 = jax.block_until_ready(decoder_forward(z_big, params_bf16))
    ref_bf16 = decoder_reference(z_big, params_bf16)
    assert out_bf16.shape == (1000, output_dim)
    assert jnp.allclose(out_bf16, ref_bf16, atol=5e-2, rtol=5e-2)

    print("KERNEL_OK")
</pallas_src>

<mosaic_0001>
module attributes {stable_mosaic.version = 11 : i64} {
  func.func @decoder_kernel(%arg0: i32, %arg1: memref<8x16xf32, #tpu.memory_space<vmem>>, %arg2: memref<16x128xf32, #tpu.memory_space<vmem>>, %arg3: memref<1x128xf32, #tpu.memory_space<vmem>>, %arg4: memref<128x128xf32, #tpu.memory_space<vmem>>, %arg5: memref<1x128xf32, #tpu.memory_space<vmem>>, %arg6: memref<128x24xf32, #tpu.memory_space<vmem>>, %arg7: memref<1x24xf32, #tpu.memory_space<vmem>>, %arg8: memref<8x24xf32, #tpu.memory_space<vmem>>) attributes {dimension_semantics = [#tpu.dimension_semantics<parallel>], iteration_bounds = array<i64: 1>, scalar_prefetch = 0 : i64, scratch_operands = 0 : i64, tpu.core_type = #tpu.core_type<tc>, window_params = [{transform_indices = @transform_0, window_bounds = array<i64: 8, 16>}, {pipeline_mode = #tpu.pipeline_mode<synchronous>, transform_indices = @transform_1, window_bounds = array<i64: 16, 128>}, {pipeline_mode = #tpu.pipeline_mode<synchronous>, transform_indices = @transform_2, window_bounds = array<i64: 1, 128>}, {pipeline_mode = #tpu.pipeline_mode<synchronous>, transform_indices = @transform_3, window_bounds = array<i64: 128, 128>}, {pipeline_mode = #tpu.pipeline_mode<synchronous>, transform_indices = @transform_4, window_bounds = array<i64: 1, 128>}, {pipeline_mode = #tpu.pipeline_mode<synchronous>, transform_indices = @transform_5, window_bounds = array<i64: 128, 24>}, {pipeline_mode = #tpu.pipeline_mode<synchronous>, transform_indices = @transform_6, window_bounds = array<i64: 1, 24>}, {transform_indices = @transform_7, window_bounds = array<i64: 8, 24>}]} {
    %c0 = arith.constant 0 : index
    %c0_0 = arith.constant 0 : index
    %0 = vector.load %arg1[%c0, %c0_0] : memref<8x16xf32, #tpu.memory_space<vmem>>, vector<8x16xf32>
    %c0_1 = arith.constant 0 : index
    %c0_2 = arith.constant 0 : index
    %1 = vector.load %arg2[%c0_1, %c0_2] : memref<16x128xf32, #tpu.memory_space<vmem>>, vector<16x128xf32>
    %cst = arith.constant dense<0.000000e+00> : vector<8x128xf32>
    %2 = tpu.matmul %0, %1, %cst {dimension_numbers = #tpu.dot_dimension_numbers<[1], [0], [0], [1], [0, 0, 1, 1], [], []>} : vector<8x16xf32>, vector<16x128xf32>, vector<8x128xf32> -> vector<8x128xf32>
    %c0_3 = arith.constant 0 : index
    %c0_4 = arith.constant 0 : index
    %3 = vector.load %arg3[%c0_3, %c0_4] : memref<1x128xf32, #tpu.memory_space<vmem>>, vector<1x128xf32>
    %4 = vector.broadcast %3 : vector<1x128xf32> to vector<8x128xf32>
    %5 = arith.addf %2, %4 : vector<8x128xf32>
    %cst_5 = arith.constant 0.000000e+00 : f32
    %6 = vector.broadcast %cst_5 : f32 to vector<8x128xf32>
    %7 = arith.maximumf %5, %6 : vector<8x128xf32>
    %c0_6 = arith.constant 0 : index
    %c0_7 = arith.constant 0 : index
    %8 = vector.load %arg4[%c0_6, %c0_7] : memref<128x128xf32, #tpu.memory_space<vmem>>, vector<128x128xf32>
    %cst_8 = arith.constant dense<0.000000e+00> : vector<8x128xf32>
    %9 = tpu.matmul %7, %8, %cst_8 {dimension_numbers = #tpu.dot_dimension_numbers<[1], [0], [0], [1], [0, 0, 1, 1], [], []>} : vector<8x128xf32>, vector<128x128xf32>, vector<8x128xf32> -> vector<8x128xf32>
    %c0_9 = arith.constant 0 : index
    %c0_10 = arith.constant 0 : index
    %10 = vector.load %arg5[%c0_9, %c0_10] : memref<1x128xf32, #tpu.memory_space<vmem>>, vector<1x128xf32>
    %11 = vector.broadcast %10 : vector<1x128xf32> to vector<8x128xf32>
    %12 = arith.addf %9, %11 : vector<8x128xf32>
    %cst_11 = arith.constant 0.000000e+00 : f32
    %13 = vector.broadcast %cst_11 : f32 to vector<8x128xf32>
    %14 = arith.maximumf %12, %13 : vector<8x128xf32>
    %c0_12 = arith.constant 0 : index
    %c0_13 = arith.constant 0 : index
    %15 = vector.load %arg6[%c0_12, %c0_13] : memref<128x24xf32, #tpu.memory_space<vmem>>, vector<128x24xf32>
    %cst_14 = arith.constant dense<0.000000e+00> : vector<8x24xf32>
    %16 = tpu.matmul %14, %15, %cst_14 {dimension_numbers = #tpu.dot_dimension_numbers<[1], [0], [0], [1], [0, 0, 1, 1], [], []>} : vector<8x128xf32>, vector<128x24xf32>, vector<8x24xf32> -> vector<8x24xf32>
    %c0_15 = arith.constant 0 : index
    %c0_16 = arith.constant 0 : index
    %17 = vector.load %arg7[%c0_15, %c0_16] : memref<1x24xf32, #tpu.memory_space<vmem>>, vector<1x24xf32>
    %18 = vector.broadcast %17 : vector<1x24xf32> to vector<8x24xf32>
    %19 = arith.addf %16, %18 : vector<8x24xf32>
    %c0_17 = arith.constant 0 : index
    %c0_18 = arith.constant 0 : index
    %20 = vector.load %arg8[%c0_17, %c0_18] : memref<8x24xf32, #tpu.memory_space<vmem>>, vector<8x24xf32>
    tpu.vector_store %arg8[%c0_17, %c0_18], %19 {strides = array<i32>} : memref<8x24xf32, #tpu.memory_space<vmem>>, vector<8x24xf32>,
    return
  }
  func.func @transform_0(%arg0: i32) -> (i32, i32) {
    %c0_i32 = arith.constant 0 : i32
    %c0_i32_0 = arith.constant 0 : i32
    return %arg0, %c0_i32 : i32, i32
  }
  func.func @transform_1(%arg0: i32) -> (i32, i32) {
    %c0_i32 = arith.constant 0 : i32
    %c0_i32_0 = arith.constant 0 : i32
    %c0_i32_1 = arith.constant 0 : i32
    return %c0_i32, %c0_i32_0 : i32, i32
  }
  func.func @transform_2(%arg0: i32) -> (i32, i32) {
    %c0_i32 = arith.constant 0 : i32
    %c0_i32_0 = arith.constant 0 : i32
    %c0_i32_1 = arith.constant 0 : i32
    return %c0_i32, %c0_i32_0 : i32, i32
  }
  func.func @transform_3(%arg0: i32) -> (i32, i32) {
    %c0_i32 = arith.constant 0 : i32
    %c0_i32_0 = arith.constant 0 : i32
    %c0_i32_1 = arith.constant 0 : i32
    return %c0_i32, %c0_i32_0 : i32, i32
  }
  func.func @transform_4(%arg0: i32) -> (i32, i32) {
    %c0_i32 = arith.constant 0 : i32
    %c0_i32_0 = arith.constant 0 : i32
    %c0_i32_1 = arith.constant 0 : i32
    return %c0_i32, %c0_i32_0 : i32, i32
  }
  func.func @transform_5(%arg0: i32) -> (i32, i32) {
    %c0_i32 = arith.constant 0 : i32
    %c0_i32_0 = arith.constant 0 : i32
    %c0_i32_1 = arith.constant 0 : i32
    return %c0_i32, %c0_i32_0 : i32, i32
  }
  func.func @transform_6(%arg0: i32) -> (i32, i32) {
    %c0_i32 = arith.constant 0 : i32
    %c0_i32_0 = arith.constant 0 : i32
    %c0_i32_1 = arith.constant 0 : i32
    return %c0_i32, %c0_i32_0 : i32, i32
  }
  func.func @transform_7(%arg0: i32) -> (i32, i32) {
    %c0_i32 = arith.constant 0 : i32
    %c0_i32_0 = arith.constant 0 : i32
    return %arg0, %c0_i32 : i32, i32
  }
}

</mosaic_0001>

<bundles_post_ra>
// kernel: _decoder_forward.1
= control target key start
LH: loop header
LB: loop body
LE: loop exit
PB: predicated region body
PF: predicated region fallthrough
CT: control target
= control target key end

     0   :  { %v458_v1 = vmov 0.0   ;;  %vm459_vm0 = vmmov 0   ;;  %vm37_vm1 = vcmask 130048   ;;  %s658_s0 = inlined_call_operand.vmem [shape: f32[8,16], index: 0, kind: input, shape index: {}]   ;;  %s659_s1 = inlined_call_operand.vmem [shape: f32[16,128], index: 1, kind: input, shape index: {}]   ;;  %s660_s2 = inlined_call_operand.vmem [shape: f32[1,128], index: 2, kind: input, shape index: {}]   ;;  %s661_s3 = inlined_call_operand.vmem [shape: f32[128,128], index: 3, kind: input, shape index: {}]   ;;  %s662_s4 = inlined_call_operand.vmem [shape: f32[1,128], index: 4, kind: input, shape index: {}]   ;;  %s663_s5 = inlined_call_operand.vmem [shape: f32[128,24], index: 5, kind: input, shape index: {}]   ;;  %s664_s6 = inlined_call_operand.vmem [shape: f32[1,24], index: 6, kind: input, shape index: {}]   ;;  %s665_s7 = inlined_call_operand.hbm [shape: f32[8,24], index: 7, kind: output, shape index: {}]  }
   0x1   :  { %v29_v0 = vld [vmem:[%s659_s1 + $0x8] sm:$0xff]  ;;  %356 = vmatprep.subr.mxu0 %v458_v1  ;;  %v28_v2 = vld [vmem:[%s659_s1] sm:$0xff]  ;;  %360 = vmatprep.mubr.msk.f32.mxu0 %vm459_vm0, %v458_v1  ;;  %v127_v3 = vld [vmem:[%s661_s3 + $0x78] sm:$0xff] }
   0x2   :  { %357 = vmatpush3.msra.mxu0 %v29_v0  ;;  %v27_v4 = vld [vmem:[%s658_s0] sm:$0xff]  ;;  %363 = vmatprep.subr.mxu1 %v458_v1  ;;  %v126_v5 = vld [vmem:[%s661_s3 + $0x70] sm:$0xff]  ;;  %v125_v6 = vld [vmem:[%s661_s3 + $0x68] sm:$0xff] }
   0x3   :  { %358 = vmatprep.subr.mxu0 %v458_v1  ;;  %364 = vmatpush3.msra.mxu1 %v127_v3 }
   0x4   :  { %359 = vmatpush3.msra.mxu0 %v28_v2  ;;  %365 = vmatprep.subr.mxu1 %v458_v1 }
   0x5   :  { %361 = vmatmul.mubr.msk.f32.vlgmr.msra.gmra.mxu0 %vm37_vm1, %v27_v4  ;;  %366 = vmatpush3.msra.mxu1 %v126_v5 }
   0x6   :  { %12 = vsyncpa [#allocation3], 0  ;;  %367 = vmatprep.subr.mxu1 %v458_v1  ;;  %v124_v7 = vld [vmem:[%s661_s3 + $0x60] sm:$0xff]  ;;  %395 = vmatprep.mubr.msk.f32.mxu1 %vm459_vm0, %v458_v1  ;;  %v123_v8 = vld [vmem:[%s661_s3 + $0x58] sm:$0xff]  ;;  %s460_s22 = smov [#allocation2]   ;;  %vm299_vm2 = vcmask 195584  }
   0x7   :  { %368 = vmatpush3.msra.mxu1 %v125_v6  ;;  %398 = vmatprep.subr.mxu0 %v458_v1  ;;  %v122_v9 = vld [vmem:[%s661_s3 + $0x50] sm:$0xff]  ;;  %v121_v10 = vld [vmem:[%s661_s3 + $0x48] sm:$0xff]  ;;  %v120_v11 = vld [vmem:[%s661_s3 + $0x40] sm:$0xff]  ;;  %s307_s23 = sshll.u32 %s460_s22, 4  ;;  %s308_s23 = int_to_ptr.vmem [resolvable:$true] %s307_s23 }
   0x8   :  { %369 = vmatprep.subr.mxu1 %v458_v1  ;;  %430 = vmatprep.mubr.msk.f32.mxu0 %vm459_vm0, %v458_v1  ;;  %v119_v12 = vld [vmem:[%s661_s3 + $0x38] sm:$0xff]  ;;  %v118_v13 = vld [vmem:[%s661_s3 + $0x30] sm:$0xff]  ;;  %v117_v14 = vld [vmem:[%s661_s3 + $0x28] sm:$0xff]  ;;  %p441_p1 = scmp.lt.s32.totalorder %s308_s23, %s308_s23 }
   0x9   :  { %370 = vmatpush3.msra.mxu1 %v124_v7  ;;  %v116_v15 = vld [vmem:[%s661_s3 + $0x20] sm:$0xff]  ;;  %v115_v16 = vld [vmem:[%s661_s3 + $0x18] sm:$0xff]  ;;  %v114_v17 = vld [vmem:[%s661_s3 + $0x10] sm:$0xff] }
   0xa   :  { %371 = vmatprep.subr.mxu1 %v458_v1  ;;  %v113_v18 = vld [vmem:[%s661_s3 + $0x8] sm:$0xff]  ;;  %v112_v19 = vld [vmem:[%s661_s3] sm:$0xff]  ;;  %v221_v20 = vld [vmem:[%s663_s5 + $0x78] sm:$0xff] }
   0xb   :  { %372 = vmatpush3.msra.mxu1 %v123_v8  ;;  %v220_v21 = vld [vmem:[%s663_s5 + $0x70] sm:$0xff]  ;;  %399 = vmatpush3.msra.mxu0 %v221_v20  ;;  %v219_v22 = vld [vmem:[%s663_s5 + $0x68] sm:$0xff]  ;;  %v218_v23 = vld [vmem:[%s663_s5 + $0x60] sm:$0xff] }
   0xc   :  { %373 = vmatprep.subr.mxu1 %v458_v1  ;;  %400 = vmatprep.subr.mxu0 %v458_v1  ;;  %v217_v24 = vld [vmem:[%s663_s5 + $0x58] sm:$0xff]  ;;  %v216_v25 = vld [vmem:[%s663_s5 + $0x50] sm:$0xff]  ;;  %v215_v26 = vld [vmem:[%s663_s5 + $0x48] sm:$0xff] }
   0xd   :  { %374 = vmatpush3.msra.mxu1 %v122_v9  ;;  %401 = vmatpush3.msra.mxu0 %v220_v21  ;;  %v214_v27 = vld [vmem:[%s663_s5 + $0x40] sm:$0xff]  ;;  %v213_v28 = vld [vmem:[%s663_s5 + $0x38] sm:$0xff]  ;;  %v212_v29 = vld [vmem:[%s663_s5 + $0x30] sm:$0xff] }
   0xe   :  { %375 = vmatprep.subr.mxu1 %v458_v1  ;;  %402 = vmatprep.subr.mxu0 %v458_v1  ;;  %v211_v30 = vld [vmem:[%s663_s5 + $0x28] sm:$0xff]  ;;  %v210_v31 = vld [vmem:[%s663_s5 + $0x20] sm:$0xff]  ;;  %v209_v32 = vld [vmem:[%s663_s5 + $0x18] sm:$0xff] }
   0xf   :  { %376 = vmatpush3.msra.mxu1 %v121_v10  ;;  %403 = vmatpush3.msra.mxu0 %v219_v22  ;;  %v315_v33 = vld [vmem:[%s660_s2] ss:$0 sm:$0xff]  ;;  %v208_v38 = vld [vmem:[%s663_s5 + $0x10] sm:$0xff]  ;;  %v207_v39 = vld [vmem:[%s663_s5 + $0x8] sm:$0xff] }
  0x10   :  { %377 = vmatprep.subr.mxu1 %v458_v1  ;;  %404 = vmatprep.subr.mxu0 %v458_v1  ;;  %v206_v40 = vld [vmem:[%s663_s5] sm:$0xff]  ;;  %s436_s5 = scalar_lea.vmem %s308_s23, 128 }
  0x11   :  { %378 = vmatpush3.msra.mxu1 %v120_v11  ;;  %405 = vmatpush3.msra.mxu0 %v218_v23  ;;  %v317_v41 = vld [vmem:[%s662_s4] ss:$0 sm:$0xff]  ;;  %p437_p0 = scmp.ne.s32.totalorder %s308_s23, %s436_s5  ;;  %p442_p2 = scmp.lt.s32.totalorder %s436_s5, %s436_s5 }
  0x12   :  { %379 = vmatprep.subr.mxu1 %v458_v1  ;;  %406 = vmatprep.subr.mxu0 %v458_v1  ;;  %v318_v46 = vld [vmem:[%s664_s6] ss:$0 sm:$0xff] }
  0x13   :  { %380 = vmatpush3.msra.mxu1 %v119_v12  ;;  %407 = vmatpush3.msra.mxu0 %v217_v24  ;;  %p443_p3 = por %p442_p2, %p441_p1 }
  0x14   :  { %381 = vmatprep.subr.mxu1 %v458_v1  ;;  %408 = vmatprep.subr.mxu0 %v458_v1 }
  0x15   :  { %382 = vmatpush3.msra.mxu1 %v118_v13  ;;  %409 = vmatpush3.msra.mxu0 %v216_v25  ;;  %p444_p4 = pnand %p443_p3, %p437_p0 }
  0x16   :  { %383 = vmatprep.subr.mxu1 %v458_v1  ;;  %410 = vmatprep.subr.mxu0 %v458_v1 }
  0x17   :  { %384 = vmatpush3.msra.mxu1 %v117_v14  ;;  %411 = vmatpush3.msra.mxu0 %v215_v26 }
  0x18   :  { %385 = vmatprep.subr.mxu1 %v458_v1  ;;  %412 = vmatprep.subr.mxu0 %v458_v1 }
  0x19   :  { %386 = vmatpush3.msra.mxu1 %v116_v15  ;;  %413 = vmatpush3.msra.mxu0 %v214_v27 }
  0x1a   :  { %387 = vmatprep.subr.mxu1 %v458_v1  ;;  %414 = vmatprep.subr.mxu0 %v458_v1 }
  0x1b   :  { %388 = vmatpush3.msra.mxu1 %v115_v16  ;;  %415 = vmatpush3.msra.mxu0 %v213_v28 }
  0x1c   :  { %389 = vmatprep.subr.mxu1 %v458_v1  ;;  %416 = vmatprep.subr.mxu0 %v458_v1 }
  0x1d   :  { %390 = vmatpush3.msra.mxu1 %v114_v17  ;;  %417 = vmatpush3.msra.mxu0 %v212_v29 }
  0x1e   :  { %391 = vmatprep.subr.mxu1 %v458_v1  ;;  %418 = vmatprep.subr.mxu0 %v458_v1 }
  0x1f   :  { %392 = vmatpush3.msra.mxu1 %v113_v18  ;;  %419 = vmatpush3.msra.mxu0 %v211_v30 }
  0x20   :  { %393 = vmatprep.subr.mxu1 %v458_v1  ;;  %420 = vmatprep.subr.mxu0 %v458_v1 }
  0x21   :  { %394 = vmatpush3.msra.mxu1 %v112_v19  ;;  %421 = vmatpush3.msra.mxu0 %v210_v31 }
  0x22   :  { %422 = vmatprep.subr.mxu0 %v458_v1 }
  0x23   :  { %423 = vmatpush3.msra.mxu0 %v209_v32 }
  0x24   :  { %424 = vmatprep.subr.mxu0 %v458_v1 }
  0x25   :  { %425 = vmatpush3.msra.mxu0 %v208_v38 }
  0x26   :  { %426 = vmatprep.subr.mxu0 %v458_v1 }
  0x27   :  { %427 = vmatpush3.msra.mxu0 %v207_v39 }
  0x28   :  { %428 = vmatprep.subr.mxu0 %v458_v1 }
  0x29   :  { %429 = vmatpush3.msra.mxu0 %v206_v40 }
  0xc5   :  { %v107_v34 = vpop.f32.mrf.mxu0 }
  0xc6   :  { %v108_v35 = vadd.f32 %v315_v33, %v107_v34 }
  0xc7   :  { %v362_v36 = vpop.f32.mrf.mxu0 }
  0xc8   :  { %v111_v37 = vmax.f32 %v108_v35, 0.0 }
  0xca   :  { %396 = vmatmul.mubr.f32.vlgmr.msra.gmra.mxu1 %v111_v37 }
 0x18a   :  { %v201_v42 = vpop.f32.mrf.mxu1 }
 0x18b   :  { %v202_v43 = vadd.f32 %v317_v41, %v201_v42 }
 0x18c   :  { %v397_v44 = vpop.f32.mrf.mxu1 }
 0x18d   :  { %v205_v45 = vmax.f32 %v202_v43, 0.0 }
 0x18f   :  { %431 = vmatmul.mubr.f32.vlgmr.msra.gmra.mxu0 %v205_v45 }
 0x24f   :  { %v295_v47 = vpop.f32.mrf.mxu0 }
 0x250   :  { %v296_v48 = vadd.f32 %v318_v46, %v295_v47 }
 0x251   :  { %v432_v49 = vpop.f32.mrf.mxu0 }
 0x252   :  { %300 = vst.msk [vmem:[#allocation2] sm:$0xff] %vm299_vm2, %v296_v48 }
 0x253   :  { %447 = shalt.err (!%p444_p4)
}
 0x254   :  { %310 = dma.vmem_to_hbm [thread:$0]  %s308_s23, 128, %s665_s7, [#allocation3]  }
 0x255   :  { %456 = dma.done.wait [#allocation3], 128  }
 0x256   :  { %457 = vsyncadd [#allocation3], 4294967168 }
 0x257   :  { %314 = vsyncpa [#allocation3], 1 }

</bundles_post_ra>
